<compile_context>
chip_gen: v7x
topology: tpu7x:2x2x1
jax: 0.10.0
libtpu: 0.0.40
codegen_flags: <defaults>
</compile_context>

<pallas_src>
import jax
import jax.numpy as jnp
from jax.experimental import pallas as pl
from jax.experimental.pallas import tpu as pltpu


def _round_up(x, m):
    return (x + m - 1) // m * m


def _com2gcn_kernel(feat_ref, ar_ref, ai_ref,
                    w1c_ref, b1_ref, w2c_ref, b2_ref,
                    wor_ref, woi_ref, bo_ref,
                    out_ref, acts_ref):
    n = ar_ref.shape[0]
    hidden = b1_ref.shape[1]

    feats = feat_ref[...]                 # (2N, F) bf16, [real ; imag] M-stacked
    ar = ar_ref[...]                      # (N, N) bf16
    ai = ai_ref[...]

    def mm(a, b):
        return jnp.dot(a, b, preferred_element_type=jnp.float32)

    # ---------------- layer 1: one lane-stacked matmul for fc1 & prop_fc1 ----
    t1 = mm(feats, w1c_ref[...])                       # (2N, 2H) f32
    t1p = t1[:, hidden:].astype(jnp.bfloat16)          # pre-transformed prop input
    # (A @ x) @ Wp == A @ (x @ Wp)  -> reassociated propagation (exact).
    zr1 = t1[:n, :hidden] + mm(ar, t1p[:n]) + b1_ref[...]     # (N, H) f32
    zi1 = t1[n:, :hidden] + mm(ai, t1p[n:]) + b1_ref[...]
    real1 = zr1 - zi1
    imag1 = zr1 + zi1      # shared fc1 => imag_real_x + real_imag_x == zr1 + zi1
    keep1 = real1 >= 0.0   # ComReLU: both parts gated by the sign of the real part
    # Write the stacked activations straight into a persistent bf16 scratch
    # (no jnp.concatenate -> no extra temp buffer through the vst slot).
    acts_ref[pl.ds(0, n), :] = jnp.where(keep1, real1, 0.0).astype(jnp.bfloat16)
    acts_ref[pl.ds(n, n), :] = jnp.where(keep1, imag1, 0.0).astype(jnp.bfloat16)
    # dropout -> identity (eval mode)

    # ---------------- layer 2 ----------------
    t2 = mm(acts_ref[...], w2c_ref[...])               # (2N, 2H) f32
    t2p = t2[:, hidden:].astype(jnp.bfloat16)
    zr2 = t2[:n, :hidden] + mm(ar, t2p[:n]) + b2_ref[...]
    zi2 = t2[n:, :hidden] + mm(ai, t2p[n:]) + b2_ref[...]
    real2 = zr2 - zi2
    imag2 = zr2 + zi2
    keep2 = real2 >= 0.0
    real2 = jnp.where(keep2, real2, 0.0).astype(jnp.bfloat16)
    imag2 = jnp.where(keep2, imag2, 0.0).astype(jnp.bfloat16)
    # dropout -> identity (eval mode)

    # ---------------- output head (query_edges is None) ----------------
    # one_dim_conv weight split host-side -> no lane-axis concat; chained
    # matmul + matmul + bias keeps the accumulation MRB-friendly on v7x.
    out_ref[...] = (mm(real2, wor_ref[...]) + mm(imag2, woi_ref[...])
                    + bo_ref[...]).astype(out_ref.dtype)


def prepare_params(params):
    """One-time host-side weight prep (hoisted out of the per-call path).

    NOTE: exactness relies on the module sharing ONE fc1/fc2 (and prop variants)
    across all four real/imag branches; if per-branch weights are ever
    introduced this prep must change.
    """
    bf = jnp.bfloat16
    hidden = params["w1"].shape[1]
    w1c = jnp.concatenate([params["w1"], params["wp1"]], axis=1).astype(bf)  # (F, 2H)
    w2c = jnp.concatenate([params["w2"], params["wp2"]], axis=1).astype(bf)  # (H, 2H)
    b1c = (params["b1"] + params["bp1"]).astype(jnp.float32)                 # (1, H)
    b2c = (params["b2"] + params["bp2"]).astype(jnp.float32)
    wo = params["wo"]                                                        # (2H, OUT)
    wo_r = wo[:hidden].astype(bf)
    wo_i = wo[hidden:].astype(bf)
    bo = params["bo"].astype(jnp.float32)                                    # (1, OUT)
    return dict(w1c=w1c, b1c=b1c, w2c=w2c, b2c=b2c, wo_r=wo_r, wo_i=wo_i, bo=bo)


@jax.jit
def com2layer_gcn_forward(real_feature, imag_feature, real_adj, imag_adj, prepped):
    """Fused forward.  Whole problem lives in VMEM (small graph sizes)."""
    n, feat_dim = real_feature.shape
    hidden = prepped["b1c"].shape[1]
    out_dim = prepped["bo"].shape[1]

    # Pad node count to a multiple of 16 so the bf16 M-stacked layout and the
    # in-kernel [:n]/[n:] sublane slices stay tile-aligned.  Zero-padded
    # adjacency rows/cols keep padded nodes inert.
    n_pad = _round_up(n, 16)
    bf = jnp.bfloat16
    rf, imf, ar, ai = real_feature, imag_feature, real_adj, imag_adj
    if n_pad != n:
        pad = n_pad - n
        rf = jnp.pad(rf, ((0, pad), (0, 0)))
        imf = jnp.pad(imf, ((0, pad), (0, 0)))
        ar = jnp.pad(ar, ((0, pad), (0, pad)))
        ai = jnp.pad(ai, ((0, pad), (0, pad)))

    feat_stack = jnp.concatenate([rf, imf], axis=0).astype(bf)   # (2Np, F)
    ar = ar.astype(bf)
    ai = ai.astype(bf)

    operands = (feat_stack, ar, ai,
                prepped["w1c"], prepped["b1c"],
                prepped["w2c"], prepped["b2c"],
                prepped["wo_r"], prepped["wo_i"], prepped["bo"])
    vmem = pl.BlockSpec(memory_space=pltpu.MemorySpace.VMEM)

    flops = (4 * n_pad * feat_dim * 2 * hidden          # t1 = feats @ [w1|wp1]
             + 4 * n_pad * n_pad * hidden               # layer-1 adjacency props
             + 4 * n_pad * hidden * 2 * hidden          # t2 = acts @ [w2|wp2]
             + 4 * n_pad * n_pad * hidden               # layer-2 adjacency props
             + 4 * n_pad * hidden * out_dim)            # output head
    bytes_accessed = (feat_stack.size * 2 + ar.size * 2 + ai.size * 2
                      + sum(int(v.size) * v.dtype.itemsize for v in operands[3:])
                      + n_pad * out_dim * 4)

    out = pl.pallas_call(
        _com2gcn_kernel,
        out_shape=jax.ShapeDtypeStruct((n_pad, out_dim), jnp.float32),
        in_specs=[vmem] * len(operands),
        out_specs=vmem,
        scratch_shapes=[pltpu.VMEM((2 * n_pad, hidden), bf)],
        compiler_params=pltpu.CompilerParams(vmem_limit_bytes=32 * 1024 * 1024),
        cost_estimate=pl.CostEstimate(flops=flops, transcendentals=0,
                                      bytes_accessed=int(bytes_accessed)),
    )(*operands)

    return out[:n]


def _init_params(key, feat_dim, hidden_dim, output_dim):
    """Deterministic synthetic params.  Linear weights stored as (in, out)."""
    ks = jax.random.split(key, 12)

    def linear(kw, kb, fan_in, fan_out):
        bound = 1.0 / jnp.sqrt(fan_in)
        w = jax.random.uniform(kw, (fan_in, fan_out), jnp.float32, -bound, bound)
        b = jax.random.uniform(kb, (1, fan_out), jnp.float32, -bound, bound)
        return w, b

    w1, b1 = linear(ks[0], ks[1], feat_dim, hidden_dim)        # real_imag_fc1
    wp1, bp1 = linear(ks[2], ks[3], feat_dim, hidden_dim)      # real_imag_prop_fc1
    w2, b2 = linear(ks[4], ks[5], hidden_dim, hidden_dim)      # real_imag_fc2
    wp2, bp2 = linear(ks[6], ks[7], hidden_dim, hidden_dim)    # real_imag_prop_fc2
    wo, bo = linear(ks[8], ks[9], 2 * hidden_dim, output_dim)  # one_dim_conv
    # real_imag_linear exists in __init__ but is unused when query_edges is None.
    wq, bq = linear(ks[10], ks[11], 4 * hidden_dim, output_dim)

    return dict(w1=w1, b1=b1, wp1=wp1, bp1=bp1,
                w2=w2, b2=b2, wp2=wp2, bp2=bp2,
                wo=wo, bo=bo, wq=wq, bq=bq)


def _reference_forward_f32(real_feature, imag_feature, real_adj, imag_adj, p):
    """Pure-f32 mirror of the PyTorch forward (original association, all four
    branches computed explicitly, eval mode, query_edges=None)."""
    def lin(x, w, b):
        return jnp.dot(x, w, preferred_element_type=jnp.float32) + b

    def mm(a, b):
        return jnp.dot(a, b, preferred_element_type=jnp.float32)

    rr = lin(real_feature, p["w1"], p["b1"]); ii = lin(imag_feature, p["w1"], p["b1"])
    ir = lin(real_feature, p["w1"], p["b1"]); ri = lin(imag_feature, p["w1"], p["b1"])
    rr = rr + lin(mm(real_adj, real_feature), p["wp1"], p["bp1"])
    ii = ii + lin(mm(imag_adj, imag_feature), p["wp1"], p["bp1"])
    ir = ir + lin(mm(real_adj, real_feature), p["wp1"], p["bp1"])
    ri = ri + lin(mm(imag_adj, imag_feature), p["wp1"], p["bp1"])
    l1r, l1i = rr - ii, ir + ri
    m = (l1r >= 0).astype(jnp.float32)
    l1r, l1i = m * l1r, m * l1i

    rr = lin(l1r, p["w2"], p["b2"]); ii = lin(l1i, p["w2"], p["b2"])
    ir = lin(l1r, p["w2"], p["b2"]); ri = lin(l1i, p["w2"], p["b2"])
    rr = rr + lin(mm(real_adj, l1r), p["wp2"], p["bp2"])
    ii = ii + lin(mm(imag_adj, l1i), p["wp2"], p["bp2"])
    ir = ir + lin(mm(real_adj, l1r), p["wp2"], p["bp2"])
    ri = ri + lin(mm(imag_adj, l1i), p["wp2"], p["bp2"])
    l2r, l2i = rr - ii, ir + ri
    m = (l2r >= 0).astype(jnp.float32)
    l2r, l2i = m * l2r, m * l2i

    x = jnp.concatenate([l2r, l2i], axis=-1)
    return lin(x, p["wo"], p["bo"])


def _reference_forward_mixed(real_feature, imag_feature, real_adj, imag_adj, p):
    """Mirrors the kernel's exact math: shared-weight identity, reassociated
    propagation, bf16 MXU inputs with f32 accumulation."""
    bf = jnp.bfloat16

    def mm(a, b):
        return jnp.dot(a.astype(bf), b.astype(bf), preferred_element_type=jnp.float32)

    H = p["w1"].shape[1]
    n = real_feature.shape[0]
    w1c = jnp.concatenate([p["w1"], p["wp1"]], axis=1)
    w2c = jnp.concatenate([p["w2"], p["wp2"]], axis=1)
    b1c = p["b1"] + p["bp1"]
    b2c = p["b2"] + p["bp2"]

    feats = jnp.concatenate([real_feature, imag_feature], axis=0)
    t1 = mm(feats, w1c)
    zr1 = t1[:n, :H] + mm(real_adj, t1[:n, H:]) + b1c
    zi1 = t1[n:, :H] + mm(imag_adj, t1[n:, H:]) + b1c
    real1, imag1 = zr1 - zi1, zr1 + zi1
    keep = real1 >= 0
    real1 = jnp.where(keep, real1, 0.0)
    imag1 = jnp.where(keep, imag1, 0.0)

    acts = jnp.concatenate([real1, imag1], axis=0)
    t2 = mm(acts, w2c)
    zr2 = t2[:n, :H] + mm(real_adj, t2[:n, H:]) + b2c
    zi2 = t2[n:, :H] + mm(imag_adj, t2[n:, H:]) + b2c
    real2, imag2 = zr2 - zi2, zr2 + zi2
    keep = real2 >= 0
    real2 = jnp.where(keep, real2, 0.0)
    imag2 = jnp.where(keep, imag2, 0.0)

    return mm(real2, p["wo"][:H]) + mm(imag2, p["wo"][H:]) + p["bo"]


if __name__ == "__main__":
    # Small, module-consistent shapes: N nodes, feat_dim, hidden_dim, output_dim.
    N, FEAT, HIDDEN, OUT = 64, 32, 32, 16

    key = jax.random.PRNGKey(0)
    k_rf, k_if, k_ar, k_ai, k_params = jax.random.split(key, 5)

    real_feature = jax.random.normal(k_rf, (N, FEAT), jnp.float32)
    imag_feature = jax.random.normal(k_if, (N, FEAT), jnp.float32)
    # Dense (normalized-ish) adjacency surrogates — the module expects real_adj /
    # imag_adj to be set externally before forward.
    real_adj = jax.random.normal(k_ar, (N, N), jnp.float32) / N
    imag_adj = jax.random.normal(k_ai, (N, N), jnp.float32) / N

    params = _init_params(k_params, FEAT, HIDDEN, OUT)
    prepped = prepare_params(params)   # one-time weight prep, hoisted off hot path

    out = com2layer_gcn_forward(real_feature, imag_feature, real_adj, imag_adj, prepped)
    out = jax.block_until_ready(out)
    assert out.shape == (N, OUT)

    # Tight check against a mirror that uses the kernel's exact mixed precision
    # and reassociated computation order.
    ref_mixed = _reference_forward_mixed(real_feature, imag_feature,
                                         real_adj, imag_adj, params)
    assert jnp.allclose(out, ref_mixed, atol=1e-3, rtol=1e-3), \
        "mismatch vs mixed-precision JAX reference"

    # Loose sanity check against the pure-f32 original-association reference
    # (bf16 rounding tolerance).
    ref_f32 = _reference_forward_f32(real_feature, imag_feature,
                                     real_adj, imag_adj, params)
    assert jnp.allclose(out, ref_f32, atol=1e-1, rtol=1e-1), \
        "mismatch vs f32 JAX reference beyond bf16 tolerance"

    print("KERNEL_OK")
</pallas_src>

<mosaic_0001>
module attributes {stable_mosaic.version = 11 : i64} {
  func.func @_com2gcn_kernel(%arg0: memref<128x32xbf16, #tpu.memory_space<vmem>>, %arg1: memref<64x64xbf16, #tpu.memory_space<vmem>>, %arg2: memref<64x64xbf16, #tpu.memory_space<vmem>>, %arg3: memref<32x64xbf16, #tpu.memory_space<vmem>>, %arg4: memref<1x32xf32, #tpu.memory_space<vmem>>, %arg5: memref<32x64xbf16, #tpu.memory_space<vmem>>, %arg6: memref<1x32xf32, #tpu.memory_space<vmem>>, %arg7: memref<32x16xbf16, #tpu.memory_space<vmem>>, %arg8: memref<32x16xbf16, #tpu.memory_space<vmem>>, %arg9: memref<1x16xf32, #tpu.memory_space<vmem>>, %arg10: memref<64x16xf32, #tpu.memory_space<vmem>>, %arg11: memref<128x32xbf16, #tpu.memory_space<vmem>>) attributes {dimension_semantics = [], scalar_prefetch = 0 : i64, scratch_operands = 1 : i64, tpu.core_type = #tpu.core_type<tc>} {
    %c0 = arith.constant 0 : index
    %c0_0 = arith.constant 0 : index
    %0 = vector.load %arg0[%c0, %c0_0] : memref<128x32xbf16, #tpu.memory_space<vmem>>, vector<128x32xbf16>
    %c0_1 = arith.constant 0 : index
    %c0_2 = arith.constant 0 : index
    %1 = vector.load %arg1[%c0_1, %c0_2] : memref<64x64xbf16, #tpu.memory_space<vmem>>, vector<64x64xbf16>
    %c0_3 = arith.constant 0 : index
    %c0_4 = arith.constant 0 : index
    %2 = vector.load %arg2[%c0_3, %c0_4] : memref<64x64xbf16, #tpu.memory_space<vmem>>, vector<64x64xbf16>
    %c0_5 = arith.constant 0 : index
    %c0_6 = arith.constant 0 : index
    %3 = vector.load %arg3[%c0_5, %c0_6] : memref<32x64xbf16, #tpu.memory_space<vmem>>, vector<32x64xbf16>
    %cst = arith.constant dense<0.000000e+00> : vector<128x64xf32>
    %4 = tpu.matmul %0, %3, %cst {dimension_numbers = #tpu.dot_dimension_numbers<[1], [0], [0], [1], [0, 0, 1, 1], [], []>} : vector<128x32xbf16>, vector<32x64xbf16>, vector<128x64xf32> -> vector<128x64xf32>
    %5 = vector.extract_strided_slice %4 {offsets = [0, 32], sizes = [128, 32], strides = [1, 1]} : vector<128x64xf32> to vector<128x32xf32>
    %6 = arith.truncf %5 : vector<128x32xf32> to vector<128x32xbf16>
    %7 = vector.extract_strided_slice %4 {offsets = [0, 0], sizes = [64, 32], strides = [1, 1]} : vector<128x64xf32> to vector<64x32xf32>
    %8 = vector.extract_strided_slice %6 {offsets = [0, 0], sizes = [64, 32], strides = [1, 1]} : vector<128x32xbf16> to vector<64x32xbf16>
    %cst_7 = arith.constant dense<0.000000e+00> : vector<64x32xf32>
    %9 = tpu.matmul %1, %8, %cst_7 {dimension_numbers = #tpu.dot_dimension_numbers<[1], [0], [0], [1], [0, 0, 1, 1], [], []>} : vector<64x64xbf16>, vector<64x32xbf16>, vector<64x32xf32> -> vector<64x32xf32>
    %10 = arith.addf %7, %9 : vector<64x32xf32>
    %c0_8 = arith.constant 0 : index
    %c0_9 = arith.constant 0 : index
    %11 = vector.load %arg4[%c0_8, %c0_9] : memref<1x32xf32, #tpu.memory_space<vmem>>, vector<1x32xf32>
    %12 = vector.broadcast %11 : vector<1x32xf32> to vector<64x32xf32>
    %13 = arith.addf %10, %12 : vector<64x32xf32>
    %14 = vector.extract_strided_slice %4 {offsets = [64, 0], sizes = [64, 32], strides = [1, 1]} : vector<128x64xf32> to vector<64x32xf32>
    %15 = vector.extract_strided_slice %6 {offsets = [64, 0], sizes = [64, 32], strides = [1, 1]} : vector<128x32xbf16> to vector<64x32xbf16>
    %cst_10 = arith.constant dense<0.000000e+00> : vector<64x32xf32>
    %16 = tpu.matmul %2, %15, %cst_10 {dimension_numbers = #tpu.dot_dimension_numbers<[1], [0], [0], [1], [0, 0, 1, 1], [], []>} : vector<64x64xbf16>, vector<64x32xbf16>, vector<64x32xf32> -> vector<64x32xf32>
    %17 = arith.addf %14, %16 : vector<64x32xf32>
    %c0_11 = arith.constant 0 : index
    %c0_12 = arith.constant 0 : index
    %18 = vector.load %arg4[%c0_11, %c0_12] : memref<1x32xf32, #tpu.memory_space<vmem>>, vector<1x32xf32>
    %19 = vector.broadcast %18 : vector<1x32xf32> to vector<64x32xf32>
    %20 = arith.addf %17, %19 : vector<64x32xf32>
    %21 = arith.subf %13, %20 : vector<64x32xf32>
    %22 = arith.addf %13, %20 : vector<64x32xf32>
    %cst_13 = arith.constant 0.000000e+00 : f32
    %23 = vector.broadcast %cst_13 : f32 to vector<64x32xf32>
    %24 = arith.cmpf oge, %21, %23 : vector<64x32xf32>
    %cst_14 = arith.constant 0.000000e+00 : f32
    %25 = vector.broadcast %cst_14 : f32 to vector<64x32xf32>
    %26 = arith.select %24, %21, %25 : vector<64x32xi1>, vector<64x32xf32>
    %27 = arith.truncf %26 : vector<64x32xf32> to vector<64x32xbf16>
    %c0_15 = arith.constant 0 : index
    %c0_16 = arith.constant 0 : index
    %28 = vector.load %arg11[%c0_15, %c0_16] : memref<128x32xbf16, #tpu.memory_space<vmem>>, vector<64x32xbf16>
    tpu.vector_store %arg11[%c0_15, %c0_16], %27 {strides = array<i32>} : memref<128x32xbf16, #tpu.memory_space<vmem>>, vector<64x32xbf16>,
    %cst_17 = arith.constant 0.000000e+00 : f32
    %29 = vector.broadcast %cst_17 : f32 to vector<64x32xf32>
    %30 = arith.select %24, %22, %29 : vector<64x32xi1>, vector<64x32xf32>
    %31 = arith.truncf %30 : vector<64x32xf32> to vector<64x32xbf16>
    %c64 = arith.constant 64 : index
    %c0_18 = arith.constant 0 : index
    %32 = vector.load %arg11[%c64, %c0_18] : memref<128x32xbf16, #tpu.memory_space<vmem>>, vector<64x32xbf16>
    tpu.vector_store %arg11[%c64, %c0_18], %31 {strides = array<i32>} : memref<128x32xbf16, #tpu.memory_space<vmem>>, vector<64x32xbf16>,
    %c0_19 = arith.constant 0 : index
    %c0_20 = arith.constant 0 : index
    %33 = vector.load %arg11[%c0_19, %c0_20] : memref<128x32xbf16, #tpu.memory_space<vmem>>, vector<128x32xbf16>
    %c0_21 = arith.constant 0 : index
    %c0_22 = arith.constant 0 : index
    %34 = vector.load %arg5[%c0_21, %c0_22] : memref<32x64xbf16, #tpu.memory_space<vmem>>, vector<32x64xbf16>
    %cst_23 = arith.constant dense<0.000000e+00> : vector<128x64xf32>
    %35 = tpu.matmul %33, %34, %cst_23 {dimension_numbers = #tpu.dot_dimension_numbers<[1], [0], [0], [1], [0, 0, 1, 1], [], []>} : vector<128x32xbf16>, vector<32x64xbf16>, vector<128x64xf32> -> vector<128x64xf32>
    %36 = vector.extract_strided_slice %35 {offsets = [0, 32], sizes = [128, 32], strides = [1, 1]} : vector<128x64xf32> to vector<128x32xf32>
    %37 = arith.truncf %36 : vector<128x32xf32> to vector<128x32xbf16>
    %38 = vector.extract_strided_slice %35 {offsets = [0, 0], sizes = [64, 32], strides = [1, 1]} : vector<128x64xf32> to vector<64x32xf32>
    %39 = vector.extract_strided_slice %37 {offsets = [0, 0], sizes = [64, 32], strides = [1, 1]} : vector<128x32xbf16> to vector<64x32xbf16>
    %cst_24 = arith.constant dense<0.000000e+00> : vector<64x32xf32>
    %40 = tpu.matmul %1, %39, %cst_24 {dimension_numbers = #tpu.dot_dimension_numbers<[1], [0], [0], [1], [0, 0, 1, 1], [], []>} : vector<64x64xbf16>, vector<64x32xbf16>, vector<64x32xf32> -> vector<64x32xf32>
    %41 = arith.addf %38, %40 : vector<64x32xf32>
    %c0_25 = arith.constant 0 : index
    %c0_26 = arith.constant 0 : index
    %42 = vector.load %arg6[%c0_25, %c0_26] : memref<1x32xf32, #tpu.memory_space<vmem>>, vector<1x32xf32>
    %43 = vector.broadcast %42 : vector<1x32xf32> to vector<64x32xf32>
    %44 = arith.addf %41, %43 : vector<64x32xf32>
    %45 = vector.extract_strided_slice %35 {offsets = [64, 0], sizes = [64, 32], strides = [1, 1]} : vector<128x64xf32> to vector<64x32xf32>
    %46 = vector.extract_strided_slice %37 {offsets = [64, 0], sizes = [64, 32], strides = [1, 1]} : vector<128x32xbf16> to vector<64x32xbf16>
    %cst_27 = arith.constant dense<0.000000e+00> : vector<64x32xf32>
    %47 = tpu.matmul %2, %46, %cst_27 {dimension_numbers = #tpu.dot_dimension_numbers<[1], [0], [0], [1], [0, 0, 1, 1], [], []>} : vector<64x64xbf16>, vector<64x32xbf16>, vector<64x32xf32> -> vector<64x32xf32>
    %48 = arith.addf %45, %47 : vector<64x32xf32>
    %c0_28 = arith.constant 0 : index
    %c0_29 = arith.constant 0 : index
    %49 = vector.load %arg6[%c0_28, %c0_29] : memref<1x32xf32, #tpu.memory_space<vmem>>, vector<1x32xf32>
    %50 = vector.broadcast %49 : vector<1x32xf32> to vector<64x32xf32>
    %51 = arith.addf %48, %50 : vector<64x32xf32>
    %52 = arith.subf %44, %51 : vector<64x32xf32>
    %53 = arith.addf %44, %51 : vector<64x32xf32>
    %cst_30 = arith.constant 0.000000e+00 : f32
    %54 = vector.broadcast %cst_30 : f32 to vector<64x32xf32>
    %55 = arith.cmpf oge, %52, %54 : vector<64x32xf32>
    %cst_31 = arith.constant 0.000000e+00 : f32
    %56 = vector.broadcast %cst_31 : f32 to vector<64x32xf32>
    %57 = arith.select %55, %52, %56 : vector<64x32xi1>, vector<64x32xf32>
    %58 = arith.truncf %57 : vector<64x32xf32> to vector<64x32xbf16>
    %cst_32 = arith.constant 0.000000e+00 : f32
    %59 = vector.broadcast %cst_32 : f32 to vector<64x32xf32>
    %60 = arith.select %55, %53, %59 : vector<64x32xi1>, vector<64x32xf32>
    %61 = arith.truncf %60 : vector<64x32xf32> to vector<64x32xbf16>
    %c0_33 = arith.constant 0 : index
    %c0_34 = arith.constant 0 : index
    %62 = vector.load %arg7[%c0_33, %c0_34] : memref<32x16xbf16, #tpu.memory_space<vmem>>, vector<32x16xbf16>
    %cst_35 = arith.constant dense<0.000000e+00> : vector<64x16xf32>
    %63 = tpu.matmul %58, %62, %cst_35 {dimension_numbers = #tpu.dot_dimension_numbers<[1], [0], [0], [1], [0, 0, 1, 1], [], []>} : vector<64x32xbf16>, vector<32x16xbf16>, vector<64x16xf32> -> vector<64x16xf32>
    %c0_36 = arith.constant 0 : index
    %c0_37 = arith.constant 0 : index
    %64 = vector.load %arg8[%c0_36, %c0_37] : memref<32x16xbf16, #tpu.memory_space<vmem>>, vector<32x16xbf16>
    %cst_38 = arith.constant dense<0.000000e+00> : vector<64x16xf32>
    %65 = tpu.matmul %61, %64, %cst_38 {dimension_numbers = #tpu.dot_dimension_numbers<[1], [0], [0], [1], [0, 0, 1, 1], [], []>} : vector<64x32xbf16>, vector<32x16xbf16>, vector<64x16xf32> -> vector<64x16xf32>
    %66 = arith.addf %63, %65 : vector<64x16xf32>
    %c0_39 = arith.constant 0 : index
    %c0_40 = arith.constant 0 : index
    %67 = vector.load %arg9[%c0_39, %c0_40] : memref<1x16xf32, #tpu.memory_space<vmem>>, vector<1x16xf32>
    %68 = vector.broadcast %67 : vector<1x16xf32> to vector<64x16xf32>
    %69 = arith.addf %66, %68 : vector<64x16xf32>
    %c0_41 = arith.constant 0 : index
    %c0_42 = arith.constant 0 : index
    %70 = vector.load %arg10[%c0_41, %c0_42] : memref<64x16xf32, #tpu.memory_space<vmem>>, vector<64x16xf32>
    tpu.vector_store %arg10[%c0_41, %c0_42], %69 {strides = array<i32>} : memref<64x16xf32, #tpu.memory_space<vmem>>, vector<64x16xf32>,
    return
  }
}

</mosaic_0001>

<bundles_post_ra>
// kernel: com2layer_gcn_forward.1
= control target key start
LH: loop header
LB: loop body
LE: loop exit
PB: predicated region body
PF: predicated region fallthrough
CT: control target
= control target key end

     0   :  { %vm124_vm0 = vcmask 261120   ;;  %vm290_vm1 = vcmask 523264   ;;  %s1890_s3 = inlined_call_operand.vmem [shape: bf16[32,64], index: 3, kind: input, shape index: {}]   ;;  %s1891_s0 = inlined_call_operand.vmem [shape: bf16[128,32], index: 0, kind: input, shape index: {}]   ;;  %s1892_s1 = inlined_call_operand.vmem [shape: bf16[64,64], index: 1, kind: input, shape index: {}]   ;;  %s1893_s2 = inlined_call_operand.vmem [shape: bf16[64,64], index: 2, kind: input, shape index: {}]   ;;  %s1894_s5 = inlined_call_operand.vmem [shape: bf16[32,64], index: 5, kind: input, shape index: {}]   ;;  %s1895_s4 = inlined_call_operand.vmem [shape: f32[1,32], index: 4, kind: input, shape index: {}]   ;;  %s1896_s8 = inlined_call_operand.vmem [shape: bf16[32,16], index: 8, kind: input, shape index: {}]   ;;  %s1897_s7 = inlined_call_operand.vmem [shape: bf16[32,16], index: 7, kind: input, shape index: {}]   ;;  %s1898_s6 = inlined_call_operand.vmem [shape: f32[1,32], index: 6, kind: input, shape index: {}]   ;;  %s1899_s9 = inlined_call_operand.vmem [shape: f32[1,16], index: 9, kind: input, shape index: {}]   ;;  %s1900_s10 = inlined_call_operand.vmem [shape: f32[64,16], index: 10, kind: output, shape index: {}]  }
   0x1   :  { %v1464_v0 = vld [vmem:[%s1890_s3] sm:$0xff]   ;;  %v1465_v1 = vld [vmem:[%s1890_s3 + $0x8] sm:$0xff]   ;;  %v1468_v4 = vld [vmem:[%s1891_s0 + $0x10] sm:$0xff]  }
   0x2   :  { %1323 = vmatprep.subr.bf16.mxu0 %v1464_v0  ;;  %v1466_v2 = vld [vmem:[%s1891_s0] sm:$0xff]   ;;  %1451 = vmatprep.subr.bf16.mxu1 %v1464_v0  ;;  %v1467_v3 = vld [vmem:[%s1891_s0 + $0x8] sm:$0xff]   ;;  %v1472_v7 = vld [vmem:[%s1891_s0 + $0x30] sm:$0xff]  }
   0x3   :  { %1324 = vmatpush3.bf16.msra.mxu0 %v1464_v0  ;;  %1453 = vmatpush3.bf16.msra.mxu1 %v1464_v0  ;;  %v1470_v5 = vld [vmem:[%s1891_s0 + $0x20] sm:$0xff]   ;;  %v1471_v6 = vld [vmem:[%s1891_s0 + $0x28] sm:$0xff]   ;;  %v1469_v8 = vld [vmem:[%s1891_s0 + $0x18] sm:$0xff]  }
   0x4   :  { %1325 = vmatprep.subr.bf16.mxu0 %v1465_v1  ;;  %1327 = vmatprep.mubr.msk.bf16.mxu0 %vm124_vm0, %v1466_v2  ;;  %v1473_v9 = vld [vmem:[%s1891_s0 + $0x38] sm:$0xff]   ;;  %s1488_s0 = smov 96   ;;  %v1474_v22 = vld [vmem:[%s1892_s1] sm:$0xff]   ;;  %v1645_v40 = vld [vmem:[%s1892_s1 + $0x8] sm:$0xff]  }
   0x5   :  { %1452 = vmatprep.subr.bf16.mxu1 %v1465_v1  ;;  %1335 = vmatprep.mubr.msk.bf16.mxu1 %vm124_vm0, %v1470_v5  ;;  %v1650_v41 = vld [vmem:[%s1892_s1 + $0x10] sm:$0xff]   ;;  %v1659_v44 = vld [vmem:[%s1892_s1 + $0x18] sm:$0xff]   ;;  %v1664_v45 = vld [vmem:[%s1893_s2] sm:$0xff]  }
   0x6   :  { %v1673_v47 = vld [vmem:[%s1893_s2 + $0x8] sm:$0xff]   ;;  %v1678_v48 = vld [vmem:[%s1893_s2 + $0x10] sm:$0xff]   ;;  %v1687_v49 = vld [vmem:[%s1893_s2 + $0x18] sm:$0xff]  }
   0x7   :  { %1326 = vmatpush3.bf16.msra.mxu0 %v1465_v1  ;;  %1454 = vmatpush3.bf16.msra.mxu1 %v1465_v1  ;;  %v1482_v50 = vld [vmem:[%s1894_s5] sm:$0xff]   ;;  %v1483_v51 = vld [vmem:[%s1894_s5 + $0x8] sm:$0xff]  }
   0x8   :  { %1375 = vmatprep.subr.bf16.mxu0 %v1482_v50 }
   0xa   :  { %1328 = vmatmul.mubr.msk.bf16.vlgmr.msra.gmra.mrb[0].mxu0 %vm124_vm0, %v1467_v3  ;;  %1336 = vmatmul.mubr.msk.bf16.vlgmr.msra.gmra.mrb[0].mxu1 %vm124_vm0, %v1471_v6 }
   0xb   :  { %1331 = vmatprep.mubr.msk.bf16.mxu0 %vm124_vm0, %v1468_v4  ;;  %1339 = vmatprep.mubr.msk.bf16.mxu1 %vm124_vm0, %v1472_v7  ;;  %v1218_v4 = vld [vmem:[%s1895_s4] ss:$0 sm:$0xff] }
   0xc   :  { %1376 = vmatpush3.bf16.msra.mxu0 %v1482_v50 }
   0xd   :  { %1377 = vmatprep.subr.bf16.mxu0 %v1483_v51 }
  0x10   :  { %1378 = vmatpush3.bf16.msra.mxu0 %v1483_v51 }
  0x12   :  { %1332 = vmatmul.mubr.msk.bf16.gmra.mrb[4].mxu0 %vm124_vm0, %v1469_v8  ;;  %1340 = vmatmul.mubr.msk.bf16.gmra.mrb[4].mxu1 %vm124_vm0, %v1473_v9 }
  0x13   :  { %1351 = vmatprep.mubr.msk.bf16.mxu1 %vm290_vm1, %v1474_v22 }
  0xdd   :  { %v1582_v10 = vpop.f32.mrb[0].mxu0  ;;  %v1584_v11 = vpop.f32.mrb[0].mxu1 }
  0xde   :  { %v1586_v12 = vpop.f32.mrb[1].mxu0  ;;  %v1588_v13 = vpop.f32.mrb[1].mxu1 }
  0xdf   :  { %v1590_v14 = vpop.f32.mrb[2].mxu0  ;;  %v1592_v15 = vpop.f32.mrb[2].mxu1 }
  0xe0   :  { %v247_v16 = vpack.c.bf16 %v1590_v14, %v1582_v10  ;;  %v1596_v17 = vpop.f32.mrb[3].mxu0  ;;  %v251_v18 = vpack.c.bf16 %v1592_v15, %v1584_v11  ;;  %v1600_v19 = vpop.f32.mrb[3].mxu1 }
  0xe1   :  { %v246_v20 = vpack.c.bf16 %v1596_v17, %v1586_v12  ;;  %v250_v21 = vpack.c.bf16 %v1600_v19, %v1588_v13 }
  0xe3   :  { %278 = vrot.lane.b32.xlu0 %v246_v20, %s1488_s0 }
  0xe5   :  { %v1610_v23 = vpop.f32.mrb[4].mxu0  ;;  %v1612_v24 = vpop.f32.mrb[4].mxu1 }
  0xe6   :  { %v1615_v25 = vpop.f32.mrb[5].mxu0  ;;  %v1617_v26 = vpop.f32.mrb[5].mxu1 }
  0xe7   :  { %280 = vrot.lane.b32.xlu0 %v247_v16, %s1488_s0  ;;  %v1620_v27 = vpop.f32.mrb[6].mxu0  ;;  %v1622_v28 = vpop.f32.mrb[6].mxu1 }
  0xe8   :  { %v249_v29 = vpack.c.bf16 %v1620_v27, %v1610_v23  ;;  %v1626_v30 = vpop.f32.mrb[7].mxu0  ;;  %v253_v31 = vpack.c.bf16 %v1622_v28, %v1612_v24  ;;  %v1630_v32 = vpop.f32.mrb[7].mxu1 }
  0xe9   :  { %v248_v33 = vpack.c.bf16 %v1626_v30, %v1615_v25  ;;  %v252_v34 = vpack.c.bf16 %v1630_v32, %v1617_v26 }
  0xeb   :  { %282 = vrot.lane.b32.xlu1 %v248_v33, %s1488_s0  ;;  %415 = vrot.lane.b32.xlu0 %v250_v21, %s1488_s0 }
  0xef   :  { %284 = vrot.lane.b32.xlu1 %v249_v29, %s1488_s0  ;;  %419 = vrot.lane.b32.xlu0 %v252_v34, %s1488_s0 }
  0xf3   :  { %417 = vrot.lane.b32.xlu1 %v251_v18, %s1488_s0 }
  0xf7   :  { %421 = vrot.lane.b32.xlu1 %v253_v31, %s1488_s0 }
 0x155   :  { %v279_v35 = vpop.permute.xlu0 %278 }
 0x156   :  { %1343 = vmatprep.subr.bf16.mxu1 %v279_v35 }
 0x157   :  { %1344 = vmatpush3.bf16.msra.mxu1 %v279_v35 }
 0x159   :  { %v281_v36 = vpop.permute.xlu0 %280 }
 0x15a   :  { %1345 = vmatprep.subr.bf16.mxu1 %v281_v36 }
 0x15b   :  { %1346 = vmatpush3.bf16.msra.mxu1 %v281_v36 }
 0x15d   :  { %v283_v37 = vpop.permute.xlu1 %282  ;;  %v416_v39 = vpop.permute.xlu0 %415 }
 0x15e   :  { %1347 = vmatprep.subr.bf16.mxu1 %v283_v37 }
 0x15f   :  { %1348 = vmatpush3.bf16.msra.mxu1 %v283_v37 }
 0x161   :  { %v285_v38 = vpop.permute.xlu1 %284  ;;  %v420_v43 = vpop.permute.xlu0 %419 }
 0x162   :  { %1349 = vmatprep.subr.bf16.mxu1 %v285_v38 }
 0x163   :  { %1350 = vmatpush3.bf16.msra.mxu1 %v285_v38 }
 0x164   :  { %1359 = vmatprep.subr.bf16.mxu1 %v416_v39 }
 0x165   :  { %v418_v42 = vpop.permute.xlu1 %417 }
 0x166   :  { %1352 = vmatmul.mubr.msk.bf16.vlgmr.msra.gmra.mrb[8].mxu1 %vm290_vm1, %v1645_v40 }
 0x167   :  { %1360 = vmatpush3.bf16.msra.mxu1 %v416_v39  ;;  %1355 = vmatprep.mubr.msk.bf16.mxu1 %vm290_vm1, %v1650_v41 }
 0x168   :  { %1361 = vmatprep.subr.bf16.mxu1 %v418_v42 }
 0x169   :  { %v422_v46 = vpop.permute.xlu1 %421 }
 0x16b   :  { %1362 = vmatpush3.bf16.msra.mxu1 %v418_v42 }
 0x16c   :  { %1363 = vmatprep.subr.bf16.mxu1 %v420_v43 }
 0x16e   :  { %1356 = vmatmul.mubr.msk.bf16.gmra.mrb[12].mxu1 %vm290_vm1, %v1659_v44 }
 0x16f   :  { %1364 = vmatpush3.bf16.msra.mxu1 %v420_v43  ;;  %1367 = vmatprep.mubr.msk.bf16.mxu1 %vm290_vm1, %v1664_v45 }
 0x170   :  { %1365 = vmatprep.subr.bf16.mxu1 %v422_v46 }
 0x173   :  { %1366 = vmatpush3.bf16.msra.mxu1 %v422_v46 }
 0x176   :  { %1368 = vmatmul.mubr.msk.bf16.vlgmr.msra.gmra.mrb[16].mxu1 %vm290_vm1, %v1673_v47 }
 0x177   :  { %1371 = vmatprep.mubr.msk.bf16.mxu1 %vm290_vm1, %v1678_v48 }
 0x17e   :  { %1372 = vmatmul.mubr.msk.bf16.gmra.mrb[20].mxu1 %vm290_vm1, %v1687_v49 }
 0x17f   :  { %1403 = vmatprep.mubr.msk.bf16.mxu1 %vm290_vm1, %v1474_v22 }
 0x239   :  { %v1353_v52 = vpop.f32.mrb[8].mxu1 }
 0x23a   :  { %v370_v53 = vadd.f32 %v1353_v52, %v1582_v10  ;;  %v337_v54 = vpop.f32.mrb[9].mxu1 }
 0x23b   :  { %v368_v55 = vadd.f32 %v337_v54, %v1586_v12  ;;  %v1354_v56 = vpop.f32.mrb[10].mxu1 }
 0x23c   :  { %v371_v57 = vadd.f32 %v1354_v56, %v1590_v14  ;;  %v340_v58 = vpop.f32.mrb[11].mxu1  ;;  %v385_v10 = vadd.f32 %v1218_v4, %v370_v53 }
 0x23d   :  { %v369_v59 = vadd.f32 %v340_v58, %v1596_v17  ;;  %v383_v17 = vadd.f32 %v1218_v4, %v368_v55 }
 0x23e   :  { %v386_v21 = vadd.f32 %v1218_v4, %v371_v57 }
 0x241   :  { %v1357_v60 = vpop.f32.mrb[12].mxu1 }
 0x242   :  { %v374_v61 = vadd.f32 %v1357_v60, %v1610_v23  ;;  %v353_v62 = vpop.f32.mrb[13].mxu1 }
 0x243   :  { %v372_v63 = vadd.f32 %v353_v62, %v1615_v25  ;;  %v1358_v0 = vpop.f32.mrb[14].mxu1 }
 0x244   :  { %v1705_v1 = vadd.f32 %v1358_v0, %v1620_v27  ;;  %v356_v2 = vpop.f32.mrb[15].mxu1  ;;  %v384_v27 = vadd.f32 %v1218_v4, %v369_v59  ;;  %v389_v31 = vadd.f32 %v1218_v4, %v374_v61 }
 0x245   :  { %v1708_v3 = vadd.f32 %v356_v2, %v1626_v30 }
 0x249   :  { %v1369_v5 = vpop.f32.mrb[16].mxu1 }
 0x24a   :  { %v506_v6 = vadd.f32 %v1369_v5, %v1584_v11  ;;  %v473_v7 = vpop.f32.mrb[17].mxu1  ;;  %v390_v5 = vadd.f32 %v1218_v4, %v1705_v1 }
 0x24b   :  { %v504_v8 = vadd.f32 %v473_v7, %v1588_v13  ;;  %v1370_v9 = vpop.f32.mrb[18].mxu1  ;;  %v388_v7 = vadd.f32 %v1218_v4, %v1708_v3 }
 0x24c   :  { %v514_v12 = vadd.f32 %v1218_v4, %v506_v6  ;;  %v507_v14 = vadd.f32 %v1370_v9, %v1592_v15  ;;  %v476_v16 = vpop.f32.mrb[19].mxu1 }
 0x24d   :  { %v512_v18 = vadd.f32 %v1218_v4, %v504_v8  ;;  %v505_v20 = vadd.f32 %v476_v16, %v1600_v19 }
 0x24e   :  { %v522_v22 = vsub.f32 %v385_v10, %v514_v12  ;;  %v530_v23 = vadd.f32 %v514_v12, %v385_v10  ;;  %v515_v25 = vadd.f32 %v1218_v4, %v507_v14 }
 0x24f   :  { %v520_v29 = vsub.f32 %v383_v17, %v512_v18  ;;  %v528_v11 = vadd.f32 %v512_v18, %v383_v17  ;;  %v513_v30 = vadd.f32 %v1218_v4, %v505_v20 }
 0x250   :  { %vm538_vm2 = vcmp.ge.f32.partialorder %v522_v22, 0.0  ;;  %v523_v13 = vsub.f32 %v386_v21, %v515_v25  ;;  %v531_v33 = vadd.f32 %v515_v25, %v386_v21 }
 0x251   :  { %v546_v34 = vsel %vm538_vm2, %v522_v22, 0.0  ;;  %v562_v35 = vsel %vm538_vm2, %v530_v23, 0.0  ;;  %vm536_vm3 = vcmp.ge.f32.partialorder %v520_v29, 0.0  ;;  %v521_v15 = vsub.f32 %v384_v27, %v513_v30  ;;  %v1373_v36 = vpop.f32.mrb[20].mxu1 }
 0x252   :  { %v544_v37 = vsel %vm536_vm3, %v520_v29, 0.0  ;;  %v560_v38 = vsel %vm536_vm3, %v528_v11, 0.0  ;;  %vm539_vm4 = vcmp.ge.f32.partialorder %v523_v13, 0.0  ;;  %v529_v19 = vadd.f32 %v513_v30, %v384_v27  ;;  %v489_v39 = vpop.f32.mrb[21].mxu1 }
 0x253   :  { %v547_v42 = vsel %vm539_vm4, %v523_v13, 0.0  ;;  %v563_v43 = vsel %vm539_vm4, %v531_v33, 0.0  ;;  %vm537_vm5 = vcmp.ge.f32.partialorder %v521_v15, 0.0  ;;  %v510_v46 = vadd.f32 %v1373_v36, %v1612_v24  ;;  %v1374_v50 = vpop.f32.mrb[22].mxu1 }
 0x254   :  { %v553_v51 = vpack.c.bf16 %v547_v42, %v546_v34  ;;  %v569_v52 = vpack.c.bf16 %v563_v43, %v562_v35  ;;  %v545_v53 = vsel %vm537_vm5, %v521_v15, 0.0  ;;  %v561_v54 = vsel %vm537_vm5, %v529_v19, 0.0  ;;  %v492_v55 = vpop.f32.mrb[23].mxu1 }
 0x255   :  { %v552_v56 = vpack.c.bf16 %v545_v53, %v544_v37  ;;  %v568_v57 = vpack.c.bf16 %v561_v54, %v560_v38  ;;  %v518_v58 = vadd.f32 %v1218_v4, %v510_v46  ;;  %v508_v59 = vadd.f32 %v489_v39, %v1617_v26 }
 0x256   :  { %557 = vst.msk [vmem:[#allocation2 + $0x8] sm:$0xff] %vm124_vm0, %v553_v51  ;;  %573 = vst.msk [vmem:[#allocation2 + $0x28] sm:$0xff] %vm124_vm0, %v569_v52  ;;  %v511_v60 = vadd.f32 %v1374_v50, %v1622_v28  ;;  %v509_v61 = vadd.f32 %v492_v55, %v1630_v32  ;;  %v387_v24 = vadd.f32 %v1218_v4, %v372_v63  ;;  %vm1179_vm3 = vcmask 130048  }
 0x257   :  { %556 = vst.msk [vmem:[#allocation2] sm:$0xff] %vm124_vm0, %v552_v56  ;;  %572 = vst.msk [vmem:[#allocation2 + $0x20] sm:$0xff] %vm124_vm0, %v568_v57  ;;  %v526_v62 = vsub.f32 %v389_v31, %v518_v58  ;;  %v534_v0 = vadd.f32 %v518_v58, %v389_v31  ;;  %v516_v2 = vadd.f32 %v1218_v4, %v508_v59 }
 0x258   :  { %v519_v6 = vadd.f32 %v1218_v4, %v511_v60  ;;  %v517_v26 = vadd.f32 %v1218_v4, %v509_v61 }
 0x259   :  { %vm542_vm6 = vcmp.ge.f32.partialorder %v526_v62, 0.0  ;;  %v524_v8 = vsub.f32 %v387_v24, %v516_v2  ;;  %v532_v9 = vadd.f32 %v516_v2, %v387_v24 }
 0x25a   :  { %v566_v28 = vsel %vm542_vm6, %v534_v0, 0.0  ;;  %v527_v10 = vsub.f32 %v390_v5, %v519_v6  ;;  %v535_v32 = vadd.f32 %v519_v6, %v390_v5  ;;  %v525_v63 = vsub.f32 %v388_v7, %v517_v26 }
 0x25b   :  { %vm540_vm7 = vcmp.ge.f32.partialorder %v524_v8, 0.0  ;;  %v533_v12 = vadd.f32 %v517_v26, %v388_v7  ;;  %v550_v14 = vsel %vm542_vm6, %v526_v62, 0.0  ;;  %v1484_v62 = vld [vmem:[%s1896_s8] sm:$0xff]  }
 0x25c   :  { %v564_v16 = vsel %vm540_vm7, %v532_v9, 0.0  ;;  %vm543_vm8 = vcmp.ge.f32.partialorder %v527_v10, 0.0  ;;  %v548_v17 = vsel %vm540_vm7, %v524_v8, 0.0  ;;  %vm541_vm9 = vcmp.ge.f32.partialorder %v525_v63, 0.0  ;;  %1427 = vmatprep.subr.bf16.mxu0 %v1484_v62 }
 0x25d   :  { %v551_v18 = vsel %vm543_vm8, %v527_v10, 0.0  ;;  %v567_v20 = vsel %vm543_vm8, %v535_v32, 0.0  ;;  %v549_v22 = vsel %vm541_vm9, %v525_v63, 0.0  ;;  %v565_v3 = vsel %vm541_vm9, %v533_v12, 0.0  ;;  %v577_v27 = vld [vmem:[#allocation2 + $0x8] sm:$0xff] }
 0x25e   :  { %v555_v1 = vpack.c.bf16 %v551_v18, %v550_v14  ;;  %v571_v21 = vpack.c.bf16 %v567_v20, %v566_v28  ;;  %v576_v4 = vld [vmem:[#allocation2] sm:$0xff]  ;;  %v554_v23 = vpack.c.bf16 %v549_v22, %v548_v17  ;;  %v570_v25 = vpack.c.bf16 %v565_v3, %v564_v16  ;;  %v581_v31 = vld [vmem:[#allocation2 + $0x28] sm:$0xff] }
 0x25f   :  { %1379 = vmatprep.mubr.msk.bf16.mxu0 %vm124_vm0, %v576_v4  ;;  %v580_v30 = vld [vmem:[#allocation2 + $0x20] sm:$0xff] }
 0x260   :  { %559 = vst.msk [vmem:[#allocation2 + $0x18] sm:$0xff] %vm124_vm0, %v555_v1  ;;  %575 = vst.msk [vmem:[#allocation2 + $0x38] sm:$0xff] %vm124_vm0, %v571_v21  ;;  %1380 = vmatmul.mubr.msk.bf16.vlgmr.msra.gmra.mrb[8].mxu0 %vm124_vm0, %v577_v27  ;;  %v1241_v21 = vld [vmem:[%s1898_s6] ss:$0 sm:$0xff] }
 0x261   :  { %558 = vst.msk [vmem:[#allocation2 + $0x10] sm:$0xff] %vm124_vm0, %v554_v23  ;;  %574 = vst.msk [vmem:[#allocation2 + $0x30] sm:$0xff] %vm124_vm0, %v570_v25  ;;  %1428 = vmatpush3.bf16.msra.mxu0 %v1484_v62 }
 0x267   :  { %v579_v11 = vld [vmem:[#allocation2 + $0x18] sm:$0xff] }
 0x268   :  { %v578_v29 = vld [vmem:[#allocation2 + $0x10] sm:$0xff]  ;;  %v583_v33 = vld [vmem:[#allocation2 + $0x38] sm:$0xff] }
 0x269   :  { %1383 = vmatprep.mubr.msk.bf16.mxu0 %vm124_vm0, %v578_v29  ;;  %v582_v13 = vld [vmem:[#allocation2 + $0x30] sm:$0xff] }
 0x26a   :  { %1384 = vmatmul.mubr.msk.bf16.gmra.mrb[12].mxu0 %vm124_vm0, %v579_v11 }
 0x26b   :  { %1387 = vmatprep.mubr.msk.bf16.mxu0 %vm124_vm0, %v580_v30 }
 0x272   :  { %1388 = vmatmul.mubr.msk.bf16.gmra.mrb[16].mxu0 %vm124_vm0, %v581_v31 }
 0x273   :  { %1391 = vmatprep.mubr.msk.bf16.mxu0 %vm124_vm0, %v582_v13 }
 0x27a   :  { %1392 = vmatmul.mubr.msk.bf16.gmra.mrb[20].mxu0 %vm124_vm0, %v583_v33 }
 0x333   :  { %v1739_v34 = vpop.f32.mrb[8].mxu0 }
 0x334   :  { %v1741_v35 = vpop.f32.mrb[9].mxu0 }
 0x335   :  { %v1743_v15 = vpop.f32.mrb[10].mxu0 }
 0x336   :  { %v722_v36 = vpack.c.bf16 %v1743_v15, %v1739_v34  ;;  %v1747_v37 = vpop.f32.mrb[11].mxu0 }
 0x337   :  { %v721_v38 = vpack.c.bf16 %v1747_v37, %v1741_v35 }
 0x338   :  { %735 = vrot.lane.b32.xlu1 %v722_v36, %s1488_s0 }
 0x339   :  { %733 = vrot.lane.b32.xlu0 %v721_v38, %s1488_s0 }
 0x33d   :  { %v1753_v19 = vpop.f32.mrb[12].mxu0 }
 0x33e   :  { %v1755_v39 = vpop.f32.mrb[13].mxu0 }
 0x33f   :  { %v1757_v42 = vpop.f32.mrb[14].mxu0 }
 0x340   :  { %v724_v43 = vpack.c.bf16 %v1757_v42, %v1753_v19  ;;  %v1761_v46 = vpop.f32.mrb[15].mxu0 }
 0x341   :  { %v723_v50 = vpack.c.bf16 %v1761_v46, %v1755_v39 }
 0x342   :  { %739 = vrot.lane.b32.xlu1 %v724_v43, %s1488_s0 }
 0x343   :  { %737 = vrot.lane.b32.xlu0 %v723_v50, %s1488_s0 }
 0x345   :  { %v1767_v51 = vpop.f32.mrb[16].mxu0 }
 0x346   :  { %v1769_v52 = vpop.f32.mrb[17].mxu0 }
 0x347   :  { %v1771_v53 = vpop.f32.mrb[18].mxu0 }
 0x348   :  { %v726_v54 = vpack.c.bf16 %v1771_v53, %v1767_v51  ;;  %v1775_v55 = vpop.f32.mrb[19].mxu0 }
 0x349   :  { %v725_v56 = vpack.c.bf16 %v1775_v55, %v1769_v52 }
 0x34a   :  { %839 = vrot.lane.b32.xlu1 %v726_v54, %s1488_s0 }
 0x34b   :  { %837 = vrot.lane.b32.xlu0 %v725_v56, %s1488_s0 }
 0x34d   :  { %v1781_v57 = vpop.f32.mrb[20].mxu0 }
 0x34e   :  { %v1783_v58 = vpop.f32.mrb[21].mxu0 }
 0x34f   :  { %v1785_v59 = vpop.f32.mrb[22].mxu0 }
 0x350   :  { %v728_v60 = vpack.c.bf16 %v1785_v59, %v1781_v57  ;;  %v1789_v61 = vpop.f32.mrb[23].mxu0 }
 0x351   :  { %v727_v24 = vpack.c.bf16 %v1789_v61, %v1783_v58 }
 0x352   :  { %843 = vrot.lane.b32.xlu1 %v728_v60, %s1488_s0 }
 0x353   :  { %841 = vrot.lane.b32.xlu0 %v727_v24, %s1488_s0 }
 0x3aa   :  { %v736_v2 = vpop.permute.xlu1 %735 }
 0x3ab   :  { %v734_v0 = vpop.permute.xlu0 %733 }
 0x3ac   :  { %1395 = vmatprep.subr.bf16.mxu1 %v734_v0 }
 0x3ad   :  { %1396 = vmatpush3.bf16.msra.mxu1 %v734_v0 }
 0x3ae   :  { %1397 = vmatprep.subr.bf16.mxu1 %v736_v2 }
 0x3b1   :  { %1398 = vmatpush3.bf16.msra.mxu1 %v736_v2 }
 0x3b4   :  { %v740_v6 = vpop.permute.xlu1 %739 }
 0x3b5   :  { %v738_v5 = vpop.permute.xlu0 %737 }
 0x3b6   :  { %1399 = vmatprep.subr.bf16.mxu1 %v738_v5 }
 0x3b7   :  { %1400 = vmatpush3.bf16.msra.mxu1 %v738_v5 }
 0x3b8   :  { %1401 = vmatprep.subr.bf16.mxu1 %v740_v6 }
 0x3bb   :  { %1402 = vmatpush3.bf16.msra.mxu1 %v740_v6 }
 0x3bc   :  { %v840_v7 = vpop.permute.xlu1 %839 }
 0x3bd   :  { %v838_v26 = vpop.permute.xlu0 %837 }
 0x3be   :  { %1404 = vmatmul.mubr.msk.bf16.vlgmr.msra.gmra.mrb[24].mxu1 %vm290_vm1, %v1645_v40  ;;  %1411 = vmatprep.subr.bf16.mxu1 %v838_v26  ;;  %v1485_v40 = vld [vmem:[%s1896_s8 + $0x8] sm:$0xff]  }
 0x3bf   :  { %1412 = vmatpush3.bf16.msra.mxu1 %v838_v26  ;;  %1407 = vmatprep.mubr.msk.bf16.mxu1 %vm290_vm1, %v1650_v41  ;;  %v1818_v41 = vld [vmem:[%s1897_s7] sm:$0xff]  }
 0x3c0   :  { %1413 = vmatprep.subr.bf16.mxu1 %v840_v7  ;;  %1429 = vmatprep.subr.bf16.mxu0 %v1485_v40 }
 0x3c1   :  { %1430 = vmatpush3.bf16.msra.mxu0 %v1485_v40 }
 0x3c2   :  { %1439 = vmatprep.subr.bf16.mxu0 %v1818_v41 }
 0x3c3   :  { %1414 = vmatpush3.bf16.msra.mxu1 %v840_v7 }
 0x3c4   :  { %v844_v9 = vpop.permute.xlu1 %843 }
 0x3c5   :  { %v842_v8 = vpop.permute.xlu0 %841 }
 0x3c6   :  { %1408 = vmatmul.mubr.msk.bf16.gmra.mrb[28].mxu1 %vm290_vm1, %v1659_v44  ;;  %1415 = vmatprep.subr.bf16.mxu1 %v842_v8 }
 0x3c7   :  { %1416 = vmatpush3.bf16.msra.mxu1 %v842_v8  ;;  %1419 = vmatprep.mubr.msk.bf16.mxu1 %vm290_vm1, %v1664_v45 }
 0x3c8   :  { %1417 = vmatprep.subr.bf16.mxu1 %v844_v9 }
 0x3cb   :  { %1418 = vmatpush3.bf16.msra.mxu1 %v844_v9 }
 0x3ce   :  { %1420 = vmatmul.mubr.msk.bf16.vlgmr.msra.gmra.mrb[32].mxu1 %vm290_vm1, %v1673_v47 }
 0x3cf   :  { %1423 = vmatprep.mubr.msk.bf16.mxu1 %vm290_vm1, %v1678_v48 }
 0x3d6   :  { %1424 = vmatmul.mubr.msk.bf16.gmra.mrb[36].mxu1 %vm290_vm1, %v1687_v49 }
 0x491   :  { %v1405_v44 = vpop.f32.mrb[24].mxu1 }
 0x492   :  { %v812_v45 = vadd.f32 %v1405_v44, %v1739_v34  ;;  %v779_v47 = vpop.f32.mrb[25].mxu1 }
 0x493   :  { %v810_v48 = vadd.f32 %v779_v47, %v1741_v35  ;;  %v1406_v49 = vpop.f32.mrb[26].mxu1 }
 0x494   :  { %v813_v28 = vadd.f32 %v1406_v49, %v1743_v15  ;;  %v782_v10 = vpop.f32.mrb[27].mxu1  ;;  %v827_v27 = vadd.f32 %v1241_v21, %v812_v45 }
 0x495   :  { %v811_v32 = vadd.f32 %v782_v10, %v1747_v37  ;;  %v825_v31 = vadd.f32 %v1241_v21, %v810_v48 }
 0x496   :  { %v828_v34 = vadd.f32 %v1241_v21, %v813_v28 }
 0x497   :  { %v826_v37 = vadd.f32 %v1241_v21, %v811_v32 }
 0x499   :  { %v1409_v63 = vpop.f32.mrb[28].mxu1 }
 0x49a   :  { %v816_v12 = vadd.f32 %v1409_v63, %v1753_v19  ;;  %v795_v14 = vpop.f32.mrb[29].mxu1 }
 0x49b   :  { %v814_v16 = vadd.f32 %v795_v14, %v1755_v39  ;;  %v1410_v17 = vpop.f32.mrb[30].mxu1 }
 0x49c   :  { %v817_v18 = vadd.f32 %v1410_v17, %v1757_v42  ;;  %v798_v20 = vpop.f32.mrb[31].mxu1  ;;  %v831_v42 = vadd.f32 %v1241_v21, %v816_v12  ;;  %v1487_v12 = vld [vmem:[%s1897_s7 + $0x8] sm:$0xff]  }
 0x49d   :  { %v815_v1 = vadd.f32 %v798_v20, %v1761_v46  ;;  %v829_v47 = vadd.f32 %v1241_v21, %v814_v16 }
 0x49e   :  { %v832_v48 = vadd.f32 %v1241_v21, %v817_v18 }
 0x49f   :  { %v830_v14 = vadd.f32 %v1241_v21, %v815_v1 }
 0x4a1   :  { %v1421_v22 = vpop.f32.mrb[32].mxu1 }
 0x4a2   :  { %v916_v3 = vadd.f32 %v1421_v22, %v1767_v51  ;;  %v883_v4 = vpop.f32.mrb[33].mxu1 }
 0x4a3   :  { %v914_v23 = vadd.f32 %v883_v4, %v1769_v52  ;;  %v1422_v25 = vpop.f32.mrb[34].mxu1 }
 0x4a4   :  { %v924_v29 = vadd.f32 %v1241_v21, %v916_v3  ;;  %v917_v11 = vadd.f32 %v1422_v25, %v1771_v53  ;;  %v886_v30 = vpop.f32.mrb[35].mxu1 }
 0x4a5   :  { %v922_v13 = vadd.f32 %v1241_v21, %v914_v23  ;;  %v915_v33 = vadd.f32 %v886_v30, %v1775_v55 }
 0x4a6   :  { %v932_v35 = vsub.f32 %v827_v27, %v924_v29  ;;  %v940_v15 = vadd.f32 %v924_v29, %v827_v27  ;;  %v925_v36 = vadd.f32 %v1241_v21, %v917_v11 }
 0x4a7   :  { %v930_v38 = vsub.f32 %v825_v31, %v922_v13  ;;  %v938_v19 = vadd.f32 %v922_v13, %v825_v31  ;;  %v923_v39 = vadd.f32 %v1241_v21, %v915_v33 }
 0x4a8   :  { %vm948_vm10 = vcmp.ge.f32.partialorder %v932_v35, 0.0  ;;  %v933_v43 = vsub.f32 %v828_v34, %v925_v36  ;;  %v941_v46 = vadd.f32 %v925_v36, %v828_v34 }
 0x4a9   :  { %v1836_v50 = vsel %vm948_vm10, %v932_v35, 0.0  ;;  %v968_v51 = vsel %vm948_vm10, %v940_v15, 0.0  ;;  %vm946_vm11 = vcmp.ge.f32.partialorder %v930_v38, 0.0  ;;  %v931_v52 = vsub.f32 %v826_v37, %v923_v39  ;;  %v1425_v53 = vpop.f32.mrb[36].mxu1 }
 0x4aa   :  { %v954_v54 = vsel %vm946_vm11, %v930_v38, 0.0  ;;  %v966_v55 = vsel %vm946_vm11, %v938_v19, 0.0  ;;  %vm949_vm12 = vcmp.ge.f32.partialorder %v933_v43, 0.0  ;;  %v939_v56 = vadd.f32 %v923_v39, %v826_v37  ;;  %v899_v60 = vpop.f32.mrb[37].mxu1 }
 0x4ab   :  { %v957_v24 = vsel %vm949_vm12, %v933_v43, 0.0  ;;  %v969_v62 = vsel %vm949_vm12, %v941_v46, 0.0  ;;  %vm947_vm13 = vcmp.ge.f32.partialorder %v931_v52, 0.0  ;;  %v920_v0 = vadd.f32 %v1425_v53, %v1781_v57  ;;  %v1426_v2 = vpop.f32.mrb[38].mxu1 }
 0x4ac   :  { %v963_v5 = vpack.c.bf16 %v957_v24, %v1836_v50  ;;  %v975_v6 = vpack.c.bf16 %v969_v62, %v968_v51  ;;  %v955_v26 = vsel %vm947_vm13, %v931_v52, 0.0  ;;  %v967_v7 = vsel %vm947_vm13, %v939_v56, 0.0  ;;  %v902_v8 = vpop.f32.mrb[39].mxu1 }
 0x4ad   :  { %v928_v9 = vadd.f32 %v1241_v21, %v920_v0  ;;  %v918_v40 = vadd.f32 %v899_v60, %v1783_v58  ;;  %v921_v44 = vadd.f32 %v1426_v2, %v1785_v59  ;;  %v919_v45 = vadd.f32 %v902_v8, %v1789_v61 }
 0x4ae   :  { %v974_v49 = vpack.c.bf16 %v967_v7, %v966_v55  ;;  %v962_v28 = vpack.c.bf16 %v955_v26, %v954_v54 }
 0x4af   :  { %v936_v10 = vsub.f32 %v831_v42, %v928_v9  ;;  %v944_v57 = vadd.f32 %v928_v9, %v831_v42  ;;  %v926_v32 = vadd.f32 %v1241_v21, %v918_v40  ;;  %v929_v63 = vadd.f32 %v1241_v21, %v921_v44 }
 0x4b0   :  { %v927_v17 = vadd.f32 %v1241_v21, %v919_v45  ;;  %1431 = vmatprep.mubr.msk.bf16.mxu0 %vm124_vm0, %v974_v49 }
 0x4b1   :  { %vm952_vm14 = vcmp.ge.f32.partialorder %v936_v10, 0.0  ;;  %v934_v58 = vsub.f32 %v829_v47, %v926_v32  ;;  %v942_v59 = vadd.f32 %v926_v32, %v829_v47  ;;  %v937_v61 = vsub.f32 %v832_v48, %v929_v63  ;;  %1432 = vmatmul.mubr.msk.bf16.vlgmr.msra.gmra.mrb[24].mxu0 %vm124_vm0, %v975_v6 }
 0x4b2   :  { %v972_v16 = vsel %vm952_vm14, %v944_v57, 0.0  ;;  %v945_v18 = vadd.f32 %v929_v63, %v832_v48  ;;  %v935_v20 = vsub.f32 %v830_v14, %v927_v17  ;;  %1440 = vmatpush3.bf16.msra.mxu0 %v1818_v41  ;;  %v943_v22 = vadd.f32 %v927_v17, %v830_v14  ;;  %v1258_v41 = vld [vmem:[%s1899_s9] ss:$0 sm:$0xff] }
 0x4b3   :  { %vm950_vm15 = vcmp.ge.f32.partialorder %v934_v58, 0.0  ;;  %vm953_vm1 = vcmp.ge.f32.partialorder %v937_v61, 0.0  ;;  %1441 = vmatprep.subr.bf16.mxu0 %v1487_v12  ;;  %v960_v3 = vsel %vm952_vm14, %v936_v10, 0.0 }
 0x4b4   :  { %v970_v1 = vsel %vm950_vm15, %v942_v59, 0.0  ;;  %v961_v21 = vsel %vm953_vm1, %v937_v61, 0.0  ;;  %v973_v4 = vsel %vm953_vm1, %v945_v18, 0.0  ;;  %vm951_vm2 = vcmp.ge.f32.partialorder %v935_v20, 0.0 }
 0x4b5   :  { %v977_v23 = vpack.c.bf16 %v973_v4, %v972_v16  ;;  %v965_v25 = vpack.c.bf16 %v961_v21, %v960_v3  ;;  %v958_v27 = vsel %vm950_vm15, %v934_v58, 0.0  ;;  %v959_v29 = vsel %vm951_vm2, %v935_v20, 0.0 }
 0x4b6   :  { %v971_v11 = vsel %vm951_vm2, %v943_v22, 0.0  ;;  %1442 = vmatpush3.bf16.msra.mxu0 %v1487_v12  ;;  %v964_v31 = vpack.c.bf16 %v959_v29, %v958_v27 }
 0x4b7   :  { %v976_v30 = vpack.c.bf16 %v971_v11, %v970_v1 }
 0x4b9   :  { %1435 = vmatprep.mubr.msk.bf16.mxu0 %vm124_vm0, %v976_v30 }
 0x4ba   :  { %1436 = vmatmul.mubr.msk.bf16.gmra.mrb[28].mxu0 %vm124_vm0, %v977_v23 }
 0x4bb   :  { %1443 = vmatprep.mubr.msk.bf16.mxu0 %vm124_vm0, %v962_v28 }
 0x4c2   :  { %1444 = vmatmul.mubr.msk.bf16.vlgmr.msra.gmra.mrb[24].mxu0 %vm124_vm0, %v963_v5 }
 0x4c3   :  { %1447 = vmatprep.mubr.msk.bf16.mxu0 %vm124_vm0, %v964_v31 }
 0x4ca   :  { %1448 = vmatmul.mubr.msk.bf16.gmra.mrb[28].mxu0 %vm124_vm0, %v965_v25 }
 0x595   :  { %v1445_v13 = vpop.f32.mrb[24].mxu0 }
 0x596   :  { %v1173_v33 = vadd.f32 %v1445_v13, %v1258_v41  ;;  %v1133_v34 = vpop.f32.mrb[25].mxu0 }
 0x597   :  { %v1171_v35 = vadd.f32 %v1258_v41, %v1133_v34  ;;  %v1446_v15 = vpop.f32.mrb[26].mxu0 }
 0x598   :  { %1182 = vst.msk [vmem:[%s1900_s10 + $0x10] sm:$0xff] %vm1179_vm3, %v1173_v33  ;;  %v1174_v36 = vadd.f32 %v1446_v15, %v1258_v41  ;;  %v1136_v37 = vpop.f32.mrb[27].mxu0 }
 0x599   :  { %1180 = vst.msk [vmem:[%s1900_s10] sm:$0xff] %vm1179_vm3, %v1171_v35  ;;  %v1172_v38 = vadd.f32 %v1258_v41, %v1136_v37 }
 0x59a   :  { %1183 = vst.msk [vmem:[%s1900_s10 + $0x18] sm:$0xff] %vm1179_vm3, %v1174_v36 }
 0x59b   :  { %1181 = vst.msk [vmem:[%s1900_s10 + $0x8] sm:$0xff] %vm1179_vm3, %v1172_v38 }
 0x59d   :  { %v1449_v19 = vpop.f32.mrb[28].mxu0 }
 0x59e   :  { %v1177_v39 = vadd.f32 %v1449_v19, %v1258_v41  ;;  %v1149_v42 = vpop.f32.mrb[29].mxu0 }
 0x59f   :  { %v1175_v43 = vadd.f32 %v1258_v41, %v1149_v42  ;;  %v1450_v46 = vpop.f32.mrb[30].mxu0 }
 0x5a0   :  { %1186 = vst.msk [vmem:[%s1900_s10 + $0x30] sm:$0xff] %vm1179_vm3, %v1177_v39  ;;  %v1178_v50 = vadd.f32 %v1450_v46, %v1258_v41  ;;  %v1152_v51 = vpop.f32.mrb[31].mxu0 }
 0x5a1   :  { %1184 = vst.msk [vmem:[%s1900_s10 + $0x20] sm:$0xff] %vm1179_vm3, %v1175_v43  ;;  %v1176_v52 = vadd.f32 %v1258_v41, %v1152_v51 }
 0x5a2   :  { %1187 = vst.msk [vmem:[%s1900_s10 + $0x38] sm:$0xff] %vm1179_vm3, %v1178_v50 }
 0x5a3   :  { %1185 = vst.msk [vmem:[%s1900_s10 + $0x28] sm:$0xff] %vm1179_vm3, %v1176_v52 }

</bundles_post_ra>
